<compile_context>
chip_gen: v6e
topology: v6e:2x2x1
jax: 0.10.0
libtpu: 0.0.40
codegen_flags: <defaults>
</compile_context>

<pallas_src>
import functools

import numpy as np
import jax
import jax.numpy as jnp
from jax.experimental import pallas as pl
from jax.experimental.pallas import tpu as pltpu


def _dino_loss_kernel(params_ref,       # SMEM (3,) f32: 1/s_temp, 1/t_temp, momentum
                      student_ref,      # VMEM (B, D)   -- crop `v` block (streamed)
                      teacher_ref,      # VMEM (2B, D)  -- resident across the grid
                      center_ref,       # VMEM (1, D)   -- resident
                      loss_ref,         # VMEM (1, 1)   out
                      center_out_ref,   # VMEM (1, D)   out
                      acc_ref,          # VMEM (1, 1)   f32 scratch (loss accumulator)
                      qsum_ref,         # VMEM (B, D)   f32 scratch (q0 + q1)
                      q0_ref,           # VMEM (B, D)   f32 scratch (q0)
                      *, batch, ncrops):
    v = pl.program_id(0)
    inv_s_temp = params_ref[0]
    inv_t_temp = params_ref[1]
    momentum = params_ref[2]

    # ---- step 0: teacher softmax, center EMA update, accumulator init ------
    @pl.when(v == 0)
    def _():
        acc_ref[...] = jnp.zeros_like(acc_ref)

        t_raw = teacher_ref[...].astype(jnp.float32)                     # (2B, D)
        c = center_ref[...].astype(jnp.float32)                          # (1, D)
        t = (t_raw - c) * inv_t_temp
        t = t - jnp.max(t, axis=-1, keepdims=True)
        t_exp = jnp.exp(t)
        row_sum = jnp.sum(t_exp, axis=-1, keepdims=True)                 # (2B, 1)
        # Normalize via a (2B,1) reciprocal + (2B,D) multiply — no (2B,D)
        # divide.  (approx=True is fine for bf16 production runs; exact keeps
        # the f32 unit test tight.)
        q = t_exp * pl.reciprocal(row_sum, approx=False)                 # (2B, D)
        q0 = q[:batch, :]
        q1 = q[batch:, :]
        q0_ref[...] = q0
        qsum_ref[...] = q0 + q1

        # Center EMA update on the raw teacher output.  This one-off (2B, D)
        # row-sum runs once per call at step 0 and is off the per-crop critical
        # path; at production sizes it can be moved onto the MXU
        # (ones(1,2B) @ teacher) per the perf review — kept as an exact f32
        # reduce here to preserve the module's f32 semantics.
        batch_center = jnp.sum(t_raw, axis=0, keepdims=True) * (1.0 / (2 * batch))
        # TODO(synk): multi-host needs an all-reduce of batch_center here.
        center_out_ref[...] = c * momentum + batch_center * (1.0 - momentum)

    # ---- per-crop student log-softmax pieces (no logp materialization) -----
    z = student_ref[...].astype(jnp.float32) * inv_s_temp                # (B, D)
    z = z - jnp.max(z, axis=-1, keepdims=True)
    log_den = jnp.log(jnp.sum(jnp.exp(z), axis=-1, keepdims=True))       # (B, 1)
    logden_sum = jnp.sum(log_den, keepdims=True)                         # (1, 1)

    # Per row:  sum_d(-q_iq * logp_v) = log_den_v - q_iq . z_v.
    # Collapsed over teacher chunks iq != v, each step needs exactly one
    # (B, D) multiply + reduce:
    #   v == 0 : pairs with q1 only
    #   v == 1 : pairs with q0 only
    #   v >= 2 : pairs with both  -> weight 2 on log_den, multiply by (q0+q1)
    @pl.when(v == 0)
    def _():
        acc_ref[...] = (acc_ref[...] + logden_sum
                        - jnp.sum((qsum_ref[...] - q0_ref[...]) * z, keepdims=True))

    @pl.when(v == 1)
    def _():
        acc_ref[...] = (acc_ref[...] + logden_sum
                        - jnp.sum(q0_ref[...] * z, keepdims=True))

    @pl.when(v >= 2)
    def _():
        acc_ref[...] = (acc_ref[...] + 2.0 * logden_sum
                        - jnp.sum(qsum_ref[...] * z, keepdims=True))

    # ---- finalize: single hoisted scale -------------------------------------
    n_terms = 2 * (ncrops - 1)
    @pl.when(v == ncrops - 1)
    def _():
        loss_ref[...] = acc_ref[...] * (1.0 / (batch * n_terms))


def dino_loss(student_output, teacher_output, center, *,
              ncrops, teacher_temp_epoch, student_temp=0.1, center_momentum=0.9):
    n_student, d = student_output.shape
    n_teacher, d_t = teacher_output.shape
    assert d == d_t
    batch = n_teacher // 2
    assert n_student == ncrops * batch
    assert ncrops >= 2
    # Best TPU layout: batch a multiple of 8 (sublanes), out_dim a multiple of
    # 128 (lanes) -> unmasked, lane-dense loads / reductions / stores.

    params = jnp.array([1.0 / student_temp, 1.0 / teacher_temp_epoch,
                        center_momentum], dtype=jnp.float32)

    kernel = functools.partial(_dino_loss_kernel, batch=batch, ncrops=ncrops)

    # VMEM budget (f32 compute): double-buffered student crop block + resident
    # teacher / center / scratch, with headroom; clamped to [8 MiB, 32 MiB] so
    # it is explicit on every generation (v5e default scoped VMEM is only 16 MiB).
    est = 4 * d * (2 * batch      # student crop block (x2 pipeline buffers)
                   + 2 * batch    # teacher (resident)
                   + 2 * batch    # qsum + q0 scratch
                   + 4)           # center in/out, loss, accumulator
    vmem_limit = int(min(max(2 * est, 8 << 20), 32 << 20))

    grid_spec = pltpu.PrefetchScalarGridSpec(
        num_scalar_prefetch=0,
        grid=(ncrops,),
        in_specs=[
            pl.BlockSpec(memory_space=pltpu.MemorySpace.SMEM),      # scalar params
            pl.BlockSpec((batch, d), lambda v: (v, 0)),             # student crop v
            pl.BlockSpec((2 * batch, d), lambda v: (0, 0)),         # teacher (resident)
            pl.BlockSpec((1, d), lambda v: (0, 0)),                 # center (resident)
        ],
        out_specs=(
            pl.BlockSpec((1, 1), lambda v: (0, 0)),                 # loss
            pl.BlockSpec((1, d), lambda v: (0, 0)),                 # new center
        ),
        scratch_shapes=[
            pltpu.VMEM((1, 1), jnp.float32),        # loss accumulator
            pltpu.VMEM((batch, d), jnp.float32),    # q0 + q1
            pltpu.VMEM((batch, d), jnp.float32),    # q0
        ],
    )

    loss, new_center = pl.pallas_call(
        kernel,
        out_shape=(jax.ShapeDtypeStruct((1, 1), jnp.float32),
                   jax.ShapeDtypeStruct((1, d), jnp.float32)),
        grid_spec=grid_spec,
        # The loss accumulates across the crop axis -> "arbitrary".
        compiler_params=pltpu.CompilerParams(
            dimension_semantics=("arbitrary",),
            vmem_limit_bytes=vmem_limit,
        ),
    )(params, student_output, teacher_output, center)
    return loss[0, 0], new_center


def _reference(student_output, teacher_output, center, *, ncrops,
               teacher_temp_epoch, student_temp=0.1, center_momentum=0.9):
    """Pure-JAX reference mirroring the PyTorch forward (world_size == 1)."""
    batch = teacher_output.shape[0] // 2
    s = student_output / student_temp
    student_chunks = [s[v * batch:(v + 1) * batch] for v in range(ncrops)]
    t = jax.nn.softmax((teacher_output - center) / teacher_temp_epoch, axis=-1)
    teacher_chunks = [t[i * batch:(i + 1) * batch] for i in range(2)]
    total, n = 0.0, 0
    for iq, q in enumerate(teacher_chunks):
        for v in range(ncrops):
            if v == iq:
                continue
            loss = jnp.sum(-q * jax.nn.log_softmax(student_chunks[v], axis=-1), axis=-1)
            total = total + jnp.mean(loss)
            n += 1
    total = total / n
    batch_center = jnp.sum(teacher_output, axis=0, keepdims=True) / teacher_output.shape[0]
    new_center = center * center_momentum + batch_center * (1 - center_momentum)
    return total, new_center


if __name__ == "__main__":
    # DINOLoss(__init__) parameters.
    out_dim = 128          # multiple of 128 -> lane-dense
    ncrops = 6             # 2 global + 4 local crops
    warmup_teacher_temp = 0.04
    teacher_temp = 0.07
    warmup_teacher_temp_epochs = 3
    nepochs = 10
    student_temp = 0.1
    center_momentum = 0.9
    epoch = 1

    teacher_temp_schedule = np.concatenate((
        np.linspace(warmup_teacher_temp, teacher_temp, warmup_teacher_temp_epochs),
        np.ones(nepochs - warmup_teacher_temp_epochs) * teacher_temp,
    ))
    temp_e = float(teacher_temp_schedule[epoch])

    # Deterministic inputs.  batch is a multiple of 8 (sublane-aligned blocks).
    batch = 8
    key = jax.random.PRNGKey(0)
    k1, k2 = jax.random.split(key)
    student_output = jax.random.normal(k1, (ncrops * batch, out_dim), dtype=jnp.float32)
    teacher_output = jax.random.normal(k2, (2 * batch, out_dim), dtype=jnp.float32)
    center = jnp.zeros((1, out_dim), dtype=jnp.float32)  # register_buffer('center', zeros(1, out_dim))

    loss, new_center = dino_loss(
        student_output, teacher_output, center,
        ncrops=ncrops, teacher_temp_epoch=temp_e,
        student_temp=student_temp, center_momentum=center_momentum)
    jax.block_until_ready((loss, new_center))

    ref_loss, ref_center = _reference(
        student_output, teacher_output, center,
        ncrops=ncrops, teacher_temp_epoch=temp_e,
        student_temp=student_temp, center_momentum=center_momentum)

    np.testing.assert_allclose(np.asarray(loss), np.asarray(ref_loss),
                               rtol=1e-4, atol=1e-5)
    np.testing.assert_allclose(np.asarray(new_center), np.asarray(ref_center),
                               rtol=1e-5, atol=1e-6)

    print("KERNEL_OK")
</pallas_src>

<mosaic_0001>
module attributes {stable_mosaic.version = 11 : i64} {
  func.func @_dino_loss_kernel(%arg0: i32, %arg1: memref<3xf32, #tpu.memory_space<smem>>, %arg2: memref<8x128xf32, #tpu.memory_space<vmem>>, %arg3: memref<16x128xf32, #tpu.memory_space<vmem>>, %arg4: memref<1x128xf32, #tpu.memory_space<vmem>>, %arg5: memref<1x1xf32, #tpu.memory_space<vmem>>, %arg6: memref<1x128xf32, #tpu.memory_space<vmem>>, %arg7: memref<1x1xf32, #tpu.memory_space<vmem>>, %arg8: memref<8x128xf32, #tpu.memory_space<vmem>>, %arg9: memref<8x128xf32, #tpu.memory_space<vmem>>) attributes {dimension_semantics = [#tpu.dimension_semantics<arbitrary>], iteration_bounds = array<i64: 6>, scalar_prefetch = 0 : i64, scratch_operands = 3 : i64, tpu.core_type = #tpu.core_type<tc>, window_params = [{transform_indices = @transform_0, window_bounds = array<i64: 3>}, {transform_indices = @transform_1, window_bounds = array<i64: 8, 128>}, {pipeline_mode = #tpu.pipeline_mode<synchronous>, transform_indices = @transform_2, window_bounds = array<i64: 16, 128>}, {pipeline_mode = #tpu.pipeline_mode<synchronous>, transform_indices = @transform_3, window_bounds = array<i64: 1, 128>}, {pipeline_mode = #tpu.pipeline_mode<synchronous>, transform_indices = @transform_4, window_bounds = array<i64: 1, 1>}, {pipeline_mode = #tpu.pipeline_mode<synchronous>, transform_indices = @transform_5, window_bounds = array<i64: 1, 128>}]} {
    %c0 = arith.constant 0 : index
    %0 = memref.load %arg1[%c0] : memref<3xf32, #tpu.memory_space<smem>>
    %c1 = arith.constant 1 : index
    %1 = memref.load %arg1[%c1] : memref<3xf32, #tpu.memory_space<smem>>
    %c2 = arith.constant 2 : index
    %2 = memref.load %arg1[%c2] : memref<3xf32, #tpu.memory_space<smem>>
    %c0_i32 = arith.constant 0 : i32
    %3 = arith.cmpi eq, %arg0, %c0_i32 : i32
    %4 = arith.extui %3 : i1 to i32
    %c0_i32_0 = arith.constant 0 : i32
    %5 = arith.cmpi ne, %4, %c0_i32_0 : i32
    scf.if %5 {
      %cst_10 = arith.constant 0.000000e+00 : f32
      %34 = vector.broadcast %cst_10 : f32 to vector<1x1xf32>
      %c0_11 = arith.constant 0 : index
      %c0_12 = arith.constant 0 : index
      %35 = vector.load %arg7[%c0_11, %c0_12] : memref<1x1xf32, #tpu.memory_space<vmem>>, vector<1x1xf32>
      tpu.vector_store %arg7[%c0_11, %c0_12], %34 {strides = array<i32>} : memref<1x1xf32, #tpu.memory_space<vmem>>, vector<1x1xf32>,
      %c0_13 = arith.constant 0 : index
      %c0_14 = arith.constant 0 : index
      %36 = vector.load %arg3[%c0_13, %c0_14] : memref<16x128xf32, #tpu.memory_space<vmem>>, vector<16x128xf32>
      %c0_15 = arith.constant 0 : index
      %c0_16 = arith.constant 0 : index
      %37 = vector.load %arg4[%c0_15, %c0_16] : memref<1x128xf32, #tpu.memory_space<vmem>>, vector<1x128xf32>
      %38 = vector.broadcast %37 : vector<1x128xf32> to vector<16x128xf32>
      %39 = arith.subf %36, %38 : vector<16x128xf32>
      %40 = vector.broadcast %1 : f32 to vector<16x128xf32>
      %41 = arith.mulf %39, %40 : vector<16x128xf32>
      %cst_17 = arith.constant dense<0xFF800000> : vector<16xf32>
      %42 = vector.multi_reduction <maximumf>, %41, %cst_17 [1] : vector<16x128xf32> to vector<16xf32>
      %43 = vector.shape_cast %42 : vector<16xf32> to vector<16x1xf32>
      %44 = vector.broadcast %43 : vector<16x1xf32> to vector<16x128xf32>
      %45 = arith.subf %41, %44 : vector<16x128xf32>
      %46 = math.exp %45 : vector<16x128xf32>
      %cst_18 = arith.constant dense<0.000000e+00> : vector<16xf32>
      %47 = vector.multi_reduction <add>, %46, %cst_18 [1] : vector<16x128xf32> to vector<16xf32>
      %48 = vector.shape_cast %47 : vector<16xf32> to vector<16x1xf32>
      %49 = tpu.reciprocal %48 : vector<16x1xf32> -> vector<16x1xf32>
      %50 = vector.broadcast %49 : vector<16x1xf32> to vector<16x128xf32>
      %51 = arith.mulf %46, %50 : vector<16x128xf32>
      %52 = vector.extract_strided_slice %51 {offsets = [0, 0], sizes = [8, 128], strides = [1, 1]} : vector<16x128xf32> to vector<8x128xf32>
      %53 = vector.extract_strided_slice %51 {offsets = [8, 0], sizes = [8, 128], strides = [1, 1]} : vector<16x128xf32> to vector<8x128xf32>
      %c0_19 = arith.constant 0 : index
      %c0_20 = arith.constant 0 : index
      %54 = vector.load %arg9[%c0_19, %c0_20] : memref<8x128xf32, #tpu.memory_space<vmem>>, vector<8x128xf32>
      tpu.vector_store %arg9[%c0_19, %c0_20], %52 {strides = array<i32>} : memref<8x128xf32, #tpu.memory_space<vmem>>, vector<8x128xf32>,
      %55 = arith.addf %52, %53 : vector<8x128xf32>
      %c0_21 = arith.constant 0 : index
      %c0_22 = arith.constant 0 : index
      %56 = vector.load %arg8[%c0_21, %c0_22] : memref<8x128xf32, #tpu.memory_space<vmem>>, vector<8x128xf32>
      tpu.vector_store %arg8[%c0_21, %c0_22], %55 {strides = array<i32>} : memref<8x128xf32, #tpu.memory_space<vmem>>, vector<8x128xf32>,
      %cst_23 = arith.constant dense<0.000000e+00> : vector<128xf32>
      %57 = vector.multi_reduction <add>, %36, %cst_23 [0] : vector<16x128xf32> to vector<128xf32>
      %58 = vector.shape_cast %57 : vector<128xf32> to vector<1x128xf32>
      %cst_24 = arith.constant 6.250000e-02 : f32
      %59 = vector.broadcast %cst_24 : f32 to vector<1x128xf32>
      %60 = arith.mulf %58, %59 : vector<1x128xf32>
      %61 = vector.broadcast %2 : f32 to vector<1x128xf32>
      %62 = arith.mulf %37, %61 : vector<1x128xf32>
      %cst_25 = arith.constant 1.000000e+00 : f32
      %63 = arith.subf %cst_25, %2 : f32
      %64 = vector.broadcast %63 : f32 to vector<1x128xf32>
      %65 = arith.mulf %60, %64 : vector<1x128xf32>
      %66 = arith.addf %62, %65 : vector<1x128xf32>
      %c0_26 = arith.constant 0 : index
      %c0_27 = arith.constant 0 : index
      %67 = vector.load %arg6[%c0_26, %c0_27] : memref<1x128xf32, #tpu.memory_space<vmem>>, vector<1x128xf32>
      tpu.vector_store %arg6[%c0_26, %c0_27], %66 {strides = array<i32>} : memref<1x128xf32, #tpu.memory_space<vmem>>, vector<1x128xf32>,
    } else {
    }
    %c0_1 = arith.constant 0 : index
    %c0_2 = arith.constant 0 : index
    %6 = vector.load %arg2[%c0_1, %c0_2] : memref<8x128xf32, #tpu.memory_space<vmem>>, vector<8x128xf32>
    %7 = vector.broadcast %0 : f32 to vector<8x128xf32>
    %8 = arith.mulf %6, %7 : vector<8x128xf32>
    %cst = arith.constant dense<0xFF800000> : vector<8xf32>
    %9 = vector.multi_reduction <maximumf>, %8, %cst [1] : vector<8x128xf32> to vector<8xf32>
    %10 = vector.shape_cast %9 : vector<8xf32> to vector<8x1xf32>
    %11 = vector.broadcast %10 : vector<8x1xf32> to vector<8x128xf32>
    %12 = arith.subf %8, %11 : vector<8x128xf32>
    %13 = math.exp %12 : vector<8x128xf32>
    %cst_3 = arith.constant dense<0.000000e+00> : vector<8xf32>
    %14 = vector.multi_reduction <add>, %13, %cst_3 [1] : vector<8x128xf32> to vector<8xf32>
    %15 = vector.shape_cast %14 : vector<8xf32> to vector<8x1xf32>
    %16 = math.log %15 : vector<8x1xf32>
    %17 = vector.shape_cast %16 : vector<8x1xf32> to vector<1x8x1xf32>
    %cst_4 = arith.constant dense<0.000000e+00> : vector<1xf32>
    %18 = vector.multi_reduction <add>, %17, %cst_4 [1, 2] : vector<1x8x1xf32> to vector<1xf32>
    %19 = vector.shape_cast %18 : vector<1xf32> to vector<1x1x1xf32>
    %20 = vector.extract %19[0, 0, 0] : f32 from vector<1x1x1xf32>
    %21 = vector.broadcast %20 : f32 to vector<1x1xf32>
    %c0_i32_5 = arith.constant 0 : i32
    %22 = arith.cmpi eq, %arg0, %c0_i32_5 : i32
    %23 = arith.extui %22 : i1 to i32
    %c0_i32_6 = arith.constant 0 : i32
    %24 = arith.cmpi ne, %23, %c0_i32_6 : i32
    scf.if %24 {
      %c0_10 = arith.constant 0 : index
      %c0_11 = arith.constant 0 : index
      %34 = vector.load %arg7[%c0_10, %c0_11] : memref<1x1xf32, #tpu.memory_space<vmem>>, vector<1x1xf32>
      %35 = arith.addf %34, %21 : vector<1x1xf32>
      %c0_12 = arith.constant 0 : index
      %c0_13 = arith.constant 0 : index
      %36 = vector.load %arg8[%c0_12, %c0_13] : memref<8x128xf32, #tpu.memory_space<vmem>>, vector<8x128xf32>
      %c0_14 = arith.constant 0 : index
      %c0_15 = arith.constant 0 : index
      %37 = vector.load %arg9[%c0_14, %c0_15] : memref<8x128xf32, #tpu.memory_space<vmem>>, vector<8x128xf32>
      %38 = arith.subf %36, %37 : vector<8x128xf32>
      %39 = arith.mulf %38, %12 : vector<8x128xf32>
      %40 = vector.shape_cast %39 : vector<8x128xf32> to vector<1x8x128xf32>
      %cst_16 = arith.constant dense<0.000000e+00> : vector<1xf32>
      %41 = vector.multi_reduction <add>, %40, %cst_16 [1, 2] : vector<1x8x128xf32> to vector<1xf32>
      %42 = vector.shape_cast %41 : vector<1xf32> to vector<1x1x1xf32>
      %43 = vector.extract %42[0, 0, 0] : f32 from vector<1x1x1xf32>
      %44 = vector.broadcast %43 : f32 to vector<1x1xf32>
      %45 = arith.subf %35, %44 : vector<1x1xf32>
      %c0_17 = arith.constant 0 : index
      %c0_18 = arith.constant 0 : index
      %46 = vector.load %arg7[%c0_17, %c0_18] : memref<1x1xf32, #tpu.memory_space<vmem>>, vector<1x1xf32>
      tpu.vector_store %arg7[%c0_17, %c0_18], %45 {strides = array<i32>} : memref<1x1xf32, #tpu.memory_space<vmem>>, vector<1x1xf32>,
    } else {
    }
    %c1_i32 = arith.constant 1 : i32
    %25 = arith.cmpi eq, %arg0, %c1_i32 : i32
    %26 = arith.extui %25 : i1 to i32
    %c0_i32_7 = arith.constant 0 : i32
    %27 = arith.cmpi ne, %26, %c0_i32_7 : i32
    scf.if %27 {
      %c0_10 = arith.constant 0 : index
      %c0_11 = arith.constant 0 : index
      %34 = vector.load %arg7[%c0_10, %c0_11] : memref<1x1xf32, #tpu.memory_space<vmem>>, vector<1x1xf32>
      %35 = arith.addf %34, %21 : vector<1x1xf32>
      %c0_12 = arith.constant 0 : index
      %c0_13 = arith.constant 0 : index
      %36 = vector.load %arg9[%c0_12, %c0_13] : memref<8x128xf32, #tpu.memory_space<vmem>>, vector<8x128xf32>
      %37 = arith.mulf %36, %12 : vector<8x128xf32>
      %38 = vector.shape_cast %37 : vector<8x128xf32> to vector<1x8x128xf32>
      %cst_14 = arith.constant dense<0.000000e+00> : vector<1xf32>
      %39 = vector.multi_reduction <add>, %38, %cst_14 [1, 2] : vector<1x8x128xf32> to vector<1xf32>
      %40 = vector.shape_cast %39 : vector<1xf32> to vector<1x1x1xf32>
      %41 = vector.extract %40[0, 0, 0] : f32 from vector<1x1x1xf32>
      %42 = vector.broadcast %41 : f32 to vector<1x1xf32>
      %43 = arith.subf %35, %42 : vector<1x1xf32>
      %c0_15 = arith.constant 0 : index
      %c0_16 = arith.constant 0 : index
      %44 = vector.load %arg7[%c0_15, %c0_16] : memref<1x1xf32, #tpu.memory_space<vmem>>, vector<1x1xf32>
      tpu.vector_store %arg7[%c0_15, %c0_16], %43 {strides = array<i32>} : memref<1x1xf32, #tpu.memory_space<vmem>>, vector<1x1xf32>,
    } else {
    }
    %c2_i32 = arith.constant 2 : i32
    %28 = arith.cmpi sge, %arg0, %c2_i32 : i32
    %29 = arith.extui %28 : i1 to i32
    %c0_i32_8 = arith.constant 0 : i32
    %30 = arith.cmpi ne, %29, %c0_i32_8 : i32
    scf.if %30 {
      %c0_10 = arith.constant 0 : index
      %c0_11 = arith.constant 0 : index
      %34 = vector.load %arg7[%c0_10, %c0_11] : memref<1x1xf32, #tpu.memory_space<vmem>>, vector<1x1xf32>
      %cst_12 = arith.constant 2.000000e+00 : f32
      %35 = vector.broadcast %cst_12 : f32 to vector<1x1xf32>
      %36 = arith.mulf %35, %21 : vector<1x1xf32>
      %37 = arith.addf %34, %36 : vector<1x1xf32>
      %c0_13 = arith.constant 0 : index
      %c0_14 = arith.constant 0 : index
      %38 = vector.load %arg8[%c0_13, %c0_14] : memref<8x128xf32, #tpu.memory_space<vmem>>, vector<8x128xf32>
      %39 = arith.mulf %38, %12 : vector<8x128xf32>
      %40 = vector.shape_cast %39 : vector<8x128xf32> to vector<1x8x128xf32>
      %cst_15 = arith.constant dense<0.000000e+00> : vector<1xf32>
      %41 = vector.multi_reduction <add>, %40, %cst_15 [1, 2] : vector<1x8x128xf32> to vector<1xf32>
      %42 = vector.shape_cast %41 : vector<1xf32> to vector<1x1x1xf32>
      %43 = vector.extract %42[0, 0, 0] : f32 from vector<1x1x1xf32>
      %44 = vector.broadcast %43 : f32 to vector<1x1xf32>
      %45 = arith.subf %37, %44 : vector<1x1xf32>
      %c0_16 = arith.constant 0 : index
      %c0_17 = arith.constant 0 : index
      %46 = vector.load %arg7[%c0_16, %c0_17] : memref<1x1xf32, #tpu.memory_space<vmem>>, vector<1x1xf32>
      tpu.vector_store %arg7[%c0_16, %c0_17], %45 {strides = array<i32>} : memref<1x1xf32, #tpu.memory_space<vmem>>, vector<1x1xf32>,
    } else {
    }
    %c5_i32 = arith.constant 5 : i32
    %31 = arith.cmpi eq, %arg0, %c5_i32 : i32
    %32 = arith.extui %31 : i1 to i32
    %c0_i32_9 = arith.constant 0 : i32
    %33 = arith.cmpi ne, %32, %c0_i32_9 : i32
    scf.if %33 {
      %c0_10 = arith.constant 0 : index
      %c0_11 = arith.constant 0 : index
      %34 = vector.load %arg7[%c0_10, %c0_11] : memref<1x1xf32, #tpu.memory_space<vmem>>, vector<1x1xf32>
      %cst_12 = arith.constant 1.250000e-02 : f32
      %35 = vector.broadcast %cst_12 : f32 to vector<1x1xf32>
      %36 = arith.mulf %34, %35 : vector<1x1xf32>
      %c0_13 = arith.constant 0 : index
      %c0_14 = arith.constant 0 : index
      %37 = vector.load %arg5[%c0_13, %c0_14] : memref<1x1xf32, #tpu.memory_space<vmem>>, vector<1x1xf32>
      tpu.vector_store %arg5[%c0_13, %c0_14], %36 {strides = array<i32>} : memref<1x1xf32, #tpu.memory_space<vmem>>, vector<1x1xf32>,
    } else {
    }
    return
  }
  func.func @transform_0(%arg0: i32) -> i32 {
    %c0_i32 = arith.constant 0 : i32
    %c0_i32_0 = arith.constant 0 : i32
    return %c0_i32 : i32
  }
  func.func @transform_1(%arg0: i32) -> (i32, i32) {
    %c0_i32 = arith.constant 0 : i32
    %c0_i32_0 = arith.constant 0 : i32
    return %arg0, %c0_i32 : i32, i32
  }
  func.func @transform_2(%arg0: i32) -> (i32, i32) {
    %c0_i32 = arith.constant 0 : i32
    %c0_i32_0 = arith.constant 0 : i32
    %c0_i32_1 = arith.constant 0 : i32
    return %c0_i32, %c0_i32_0 : i32, i32
  }
  func.func @transform_3(%arg0: i32) -> (i32, i32) {
    %c0_i32 = arith.constant 0 : i32
    %c0_i32_0 = arith.constant 0 : i32
    %c0_i32_1 = arith.constant 0 : i32
    return %c0_i32, %c0_i32_0 : i32, i32
  }
  func.func @transform_4(%arg0: i32) -> (i32, i32) {
    %c0_i32 = arith.constant 0 : i32
    %c0_i32_0 = arith.constant 0 : i32
    %c0_i32_1 = arith.constant 0 : i32
    return %c0_i32, %c0_i32_0 : i32, i32
  }
  func.func @transform_5(%arg0: i32) -> (i32, i32) {
    %c0_i32 = arith.constant 0 : i32
    %c0_i32_0 = arith.constant 0 : i32
    %c0_i32_1 = arith.constant 0 : i32
    return %c0_i32, %c0_i32_0 : i32, i32
  }
}

</mosaic_0001>

<bundles_post_ra>
// kernel: tpu_custom_call.1
= control target key start
LH: loop header
LB: loop body
LE: loop exit
PB: predicated region body
PF: predicated region fallthrough
CT: control target
= control target key end

     0   :  { %11 = vsyncpa [#allocation8], 0  ;;  %s1004_s0 = inlined_call_operand.hbm [shape: f32[3], index: 0, kind: input, shape index: {}]   ;;  %s1005_s1 = inlined_call_operand.hbm [shape: f32[48,128], index: 1, kind: input, shape index: {}]   ;;  %s1006_s2 = inlined_call_operand.hbm [shape: f32[16,128], index: 2, kind: input, shape index: {}]   ;;  %s1007_s3 = inlined_call_operand.vmem [shape: f32[1,128], index: 3, kind: input, shape index: {}]   ;;  %s1008_s4 = inlined_call_operand.hbm [shape: f32[1,1], index: 4, kind: output, shape index: {0}]   ;;  %s1009_s5 = inlined_call_operand.hbm [shape: f32[1,128], index: 5, kind: output, shape index: {1}]  }
   0x1   :  { %12 = vsyncpa [#allocation6], 0 }
   0x2   :  { %14 = vsyncpa [#allocation6 + $0x1], 0 }
   0x3   :  { %15 = vsyncpa [#allocation11], 0 }
   0x4   :  { %16 = vsyncpa [#allocation7], 0 }
   0x5   :  { %17 = vsyncpa [#allocation14], 0  ;;  %s835_s18 = smov 0   ;;  %s837_s19 = smov 0  }
   0x6   :  { %s839_s20 = smov 0   ;;  %s841_s21 = smov 0  }
   0x7 LB: > { %s854_s22 = sadd.s32 4294967295, %s795_s21   ;;  %p64_p0 = scmp.ne.s32.totalorder %s787_s19, %s783_s18  ;;  %s795_s21 = sphi %s841_s21, %s1028_s21   ;;  %s791_s20 = sphi %s839_s20, %s1027_s20   ;;  %s787_s19 = sphi %s837_s19, %s1026_s19   ;;  %s783_s18 = sphi %s835_s18, %s1025_s18  }
   0x8   : > { %p1010_p1 = scmp.eq.s32.totalorder %s854_s22, 0  ;;  %p512_p2 = scmp.ge.s32.totalorder %s795_s21, 1 }
   0x9   : > { %p159_p3 = scmp.lt.s32.totalorder %s795_s21, 7  ;;  %s797_s25 = smov [#allocation10]  }
   0xa   : > { %p863_p5 = por %p1010_p1, %p64_p0  ;;  %s180_s26 = sshll.u32 %s797_s25, 4  ;;  %s181_s26 = int_to_ptr.vmem [resolvable:$true] %s180_s26 }
   0xb   : > { %p867_p6 = pnand %p512_p2, %p159_p3  ;;  %s880_s28 = sadd.s32 1, %s795_s21  }
   0xc   : > { %s1013_s23 = scalar_select %p863_p5, 1, 0 }
   0xd   : > { %s1014_s24 = scalar_select %p867_p6, 1, 0 }
   0xe   : > { %p561_p7 = pneg %p867_p6  ;;  %s48_s29 = ssub.s32 %s795_s21, %s880_s28 }
   0xf   : > { %s798_s30 = smov [#allocation5]   ;;  %s654_s8 = scalar_lea.vmem %s181_s26, 256 }
  0x10   : > { %p875_p8 = pnand %p561_p7, %p1010_p1  ;;  %p655_p10 = scmp.ne.s32.totalorder %s181_s26, %s654_s8 }
  0x11   : > { %p662_p13 = scmp.lt.s32.totalorder %s181_s26, %s181_s26  ;;  %p663_p0 = scmp.lt.s32.totalorder %s654_s8, %s654_s8 }
  0x12   : > { %564 = dma.hbm_to_smem (!%p875_p8), %s1004_s0, 16, %s798_s30, [#allocation8]  }
  0x13   : > { %p645_p9 = pneg %p875_p8  ;;  %p664_p2 = por %p663_p0, %p662_p13 }
  0x15   : > { %p657_p11 = pnand %p655_p10, %p645_p9 }
  0x17   : > { %p658_p12 = pneg %p657_p11 }
  0x19   : > { %p665_p3 = pnand %p664_p2, %p658_p12 }
  0x1b   : > { %668 = shalt.err (!%p665_p3)
}
  0x1c   : > { %s799_s9 = smov 128   ;;  %s800_s10 = smov 8  }
  0x1d   : > { %567 = dma.hbm_to_vmem [thread:$0]  (!%p875_p8), %s1006_s2, 256, %s181_s26, [#allocation11], %s799_s9, %s799_s9, %s800_s10  }
  0x1e   : > { %p49_p7 = scmp.eq.s32.totalorder %s48_s29, 0  ;;  %s51_s13 = sadd.s32 1, %s791_s20 }
  0x1f   : > { %p58_p9 = scmp.ne.s32.totalorder %s791_s20, %s787_s19  ;;  %p59_p10 = scmp.eq.s32.totalorder %s795_s21, 0 }
  0x20   : > { %s901_s14 = scalar_select %p49_p7, %s791_s20, %s51_s13  }
  0x21   : > { %p60_p11 = por %p59_p10, %p58_p9  ;;  %p574_p12 = scmp.lt.s32.totalorder %s795_s21, 6 }
  0x22   : > { %s197_s15 = sand.u32 1, %s791_s20   ;;  %s517_s16 = sshll.u32 %s795_s21, 7 }
  0x23   : > { %s516_s17 = sshll.u32 %s197_s15, 3  ;;  %s909_s30 = scalar_lea.hbm %s1005_s1, %s517_s16 }
  0x24   : > { %s201_s26 = scalar_lea.vmem [#allocation9], %s516_s17  ;;  %p911_p8 = pnand %p574_p12, %p60_p11 }
  0x25   : > { %s208_s27 = sshll.u32 %s201_s26, 4  ;;  %s198_s6 = scalar_lea.sflag [#allocation6], %s197_s15  ;;  %s209_s27 = int_to_ptr.vmem [resolvable:$true] %s208_s27 }
  0x26   : > { %s669_s7 = scalar_lea.hbm %s909_s30, 128  ;;  %p671_p0 = pneg %p911_p8 }
  0x27   : > { %p670_p13 = scmp.ne.s32.totalorder %s909_s30, %s669_s7  ;;  %s674_s9 = scalar_lea.hbm %s1005_s1, 768 }
  0x28   : > { %p675_p7 = scmp.lt.s32.totalorder %s909_s30, %s1005_s1  ;;  %p676_p9 = scmp.lt.s32.totalorder %s674_s9, %s669_s7 }
  0x29   : > { %p672_p2 = pnand %p671_p0, %p670_p13 }
  0x2a   : > { %p677_p10 = por %p676_p9, %p675_p7 }
  0x2b   : > { %p673_p3 = pneg %p672_p2 }
  0x2d   : > { %p678_p11 = pnand %p677_p10, %p673_p3 }
  0x2f   : > { %681 = shalt.err (!%p678_p11)
}
  0x30   : > { %s682_s12 = scalar_lea.vmem %s209_s27, 128  ;;  %s801_s13 = smov [#allocation9]  }
  0x31   : > { %p683_p12 = scmp.ne.s32.totalorder %s209_s27, %s682_s12  ;;  %s687_s15 = sshll.u32 %s801_s13, 4  ;;  %s688_s15 = int_to_ptr.vmem [resolvable:$false] %s687_s15 }
  0x32   : > { %s689_s16 = scalar_lea.vmem %s688_s15, 256  ;;  %p690_p13 = scmp.lt.s32.totalorder %s209_s27, %s688_s15 }
  0x33   : > { %p685_p4 = pnand %p683_p12, %p671_p0  ;;  %p691_p2 = scmp.lt.s32.totalorder %s689_s16, %s682_s12 }
  0x35   : > { %p686_p1 = pneg %p685_p4  ;;  %p692_p5 = por %p691_p2, %p690_p13 }
  0x37   : > { %p693_p6 = pnand %p692_p5, %p686_p1 }
  0x39   : > { %696 = shalt.err (!%p693_p6)
}
  0x3a   : > { %571 = dma.hbm_to_vmem [thread:$0]  (!%p911_p8), %s909_s30, 128, %s209_s27, %s198_s6  }
  0x3b   : > { %p1017_p3 = scmp.ne.s32.totalorder %s1014_s24, 0 }
  0x3c   : > { %p1018_p7 = scmp.eq.s32.totalorder (!%p1017_p3), %s854_s22, 0 }
  0x3d   : > { %217 = sbr.rel (%p1017_p3) target bundleno = 1603 (0x643), region = 36 }
  0x42   : > { %762 = dma.done.wait (%p1018_p7), [#allocation8], 16   ;;  %p1019_p4 = pmov %p1018_p7 }
  0x43   : > { %s223_s17 = sand.u32 1, %s787_s19   ;;  %p1020_p1 = scmp.ne.s32.totalorder %s1013_s23, 0 }
  0x44   : > { %764 = vsyncadd (%p1019_p4), [#allocation8], 4294967280  ;;  %s936_s18 = sshll.u32 %s223_s17, 3  ;;  %s224_s25 = scalar_lea.sflag [#allocation6], %s223_s17 }
  0x45   : > { %s227_s26 = scalar_lea.vmem [#allocation9], %s936_s18 }
  0x46   : > { %766 = dma.done.wait (%p1020_p1), %s224_s25, 128  }
  0x47   : > { %768 = vsyncadd (%p1020_p1), %s224_s25, 4294967168  ;;  %p1021_p5 = pmov %p1019_p4 }
  0x48   : > { %p1022_p6 = pmov %p1019_p4 }
  0x49   : > { %770 = dma.done.wait (%p1021_p5), [#allocation11], 256  }
  0x4a   : > { %772 = vsyncadd (%p1022_p6), [#allocation11], 4294967040 }
  0x4b   : > { %236 = sfence }
  0x4c   : > { %s947_s24 = sld [smem:[#allocation5]]  ;;  %p1023_p8 = scmp.ne.s32.totalorder %s854_s22, 0 }
  0x4d   : > { %s522_s30 = sld [smem:[#allocation5 + $0x1]] }
  0x4e   : > { %s523_s27 = sld [smem:[#allocation5 + $0x2]]  ;;  %260 = sbr.rel (%p1023_p8) target bundleno = 412 (0x19c), region = 52 }
  0x53   : > { %v263_v0 = vld [vmem:[#allocation10] sm:$0xff]  ;;  %v267_v1 = vlaneseq  ;;  %v264_v2 = vld [vmem:[#allocation10 + $0x8] sm:$0xff]  ;;  %v265_v5 = vld [vmem:[%s1007_s3] sm:$0x1]  ;;  %v274_v10 = vstv %s522_s30  ;;  %vm261_vm0 = vcmask 0   ;;  %v802_v33 = vmov 0.0  }
  0x54   : > { %v298_v3 = vadd.f32 %v264_v2, %v263_v0  ;;  %s308_s6 = ssub.f32 1.0, %s523_s27  ;;  %v306_v17 = vstv %s523_s27  ;;  %262 = vst.msk [vmem:[#allocation2] sm:$0x1] %vm261_vm0, %v802_v33 }
  0x55   : > { %v268_v4 = vshrl.u32 %v267_v1, 7  ;;  %v307_v21 = vmul.f32 %v306_v17, %v265_v5 }
  0x56   : > { %v299_v6 = vrot.slane %v298_v3, 4  ;;  %v309_v20 = vstv %s308_s6 }
  0x57   : > { %v269_v7 = vsub.s32 0, %v268_v4 }
  0x58   : > { %v300_v8 = vadd.f32 %v299_v6, %v298_v3 }
  0x59   : > { %v270_v9 = vrot.slane %v265_v5, %v269_v7 }
  0x5a   : > { %v301_v11 = vrot.slane %v300_v8, 2 }
  0x5b   : > { %v272_v12 = vsub.f32 %v263_v0, %v270_v9  ;;  %v273_v13 = vsub.f32 %v264_v2, %v270_v9 }
  0x5c   : > { %v302_v14 = vadd.f32 %v301_v11, %v300_v8 }
  0x5d   : > { %v275_v15 = vmul.f32 %v274_v10, %v272_v12  ;;  %v276_v18 = vmul.f32 %v274_v10, %v273_v13 }
  0x5e   : > { %v303_v16 = vrot.slane %v302_v14, 1 }
  0x5f   : > { %277 = vmax.xlane.f32.xlu0 %v275_v15 }
  0x60   : > { %v304_v19 = vadd.f32 %v303_v16, %v302_v14 }
  0x62   : > { %v305_v22 = vmul.f32 0.0625, %v304_v19 }
  0x63   : > { %279 = vmax.xlane.f32.xlu0 %v276_v18 }
  0x64   : > { %v310_v23 = vmul.f32 %v309_v20, %v305_v22 }
  0x66   : > { %v311_v24 = vadd.f32 %v310_v23, %v307_v21 }
  0x68   : > { %312 = vst [vmem:[#allocation13] sm:$0x1] %v311_v24 }
  0xe8   : > { %v278_v25 = vpop.xlane.xlu0 %277 }
  0xe9   : > { %v281_v26 = vsub.f32 %v275_v15, %v278_v25 }
  0xeb   : > { %v283_v27 = vmul.f32 1.442695, %v281_v26 }
  0xec   : > { %v280_v28 = vpop.xlane.xlu0 %279 }
  0xed   : > { %620 = vpow2.f32 %v283_v27  ;;  %v282_v29 = vsub.f32 %v276_v18, %v280_v28 }
  0xef   : > { %v285_v30 = vmul.f32 1.442695, %v282_v29 }
  0xf1   : > { %622 = vpow2.f32 %v285_v30 }
  0xfa   : > { %v621_v31 = vpop.eup %620 }
  0xfb   : > { %287 = vadd.xlane.f32.xlu1 %v621_v31 }
  0xfe   : > { %v623_v32 = vpop.eup %622 }
  0xff   : > { %289 = vadd.xlane.f32.xlu1 %v623_v32 }
 0x184   : > { %v288_v34 = vpop.xlane.xlu1 %287 }
 0x185   : > { %624 = vrcp.f32 %v288_v34 }
 0x188   : > { %v290_v35 = vpop.xlane.xlu1 %289 }
 0x189   : > { %626 = vrcp.f32 %v290_v35 }
 0x192   : > { %v625_v36 = vpop.eup %624 }
 0x193   : > { %v293_v37 = vmul.f32 %v625_v36, %v621_v31 }
 0x195   : > { %295 = vst [vmem:[#allocation4] sm:$0xff] %v293_v37 }
 0x196   : > { %v627_v38 = vpop.eup %626 }
 0x197   : > { %v294_v39 = vmul.f32 %v627_v38, %v623_v32 }
 0x199   : > { %v296_v40 = vadd.f32 %v294_v39, %v293_v37 }
 0x19b   : > { %297 = vst [vmem:[#allocation3] sm:$0xff] %v296_v40 }
 0x19c PF: > { %v313_v41 = vld [vmem:[%s227_s26] sm:$0xff]  ;;  %v314_v42 = vstv %s947_s24  ;;  %vm325_vm1 = vcmask 7168   ;;  %p1024_p0 = scmp.ne.s32.totalorder %s854_s22, 0 }
 0x19d   : > { %v315_v43 = vmul.f32 %v314_v42, %v313_v41 }
 0x19f   : > { %316 = vmax.xlane.f32.xlu0 %v315_v43 }
 0x228   : > { %v317_v44 = vpop.xlane.xlu0 %316 }
 0x229   : > { %v957_v45 = vsub.f32 %v315_v43, %v317_v44 }
 0x22b   : > { %v319_v46 = vmul.f32 1.442695, %v957_v45 }
 0x22d   : > { %628 = vpow2.f32 %v319_v46 }
 0x23a   : > { %v629_v47 = vpop.eup %628 }
 0x23b   : > { %321 = vadd.xlane.f32.xlu0 %v629_v47 }
 0x2c4   : > { %v322_v48 = vpop.xlane.xlu0 %321 }
 0x2c5   : > { %630 = vlog2.f32 %v322_v48 }
 0x2d2   : > { %v631_v49 = vpop.eup %630 }
 0x2d3   : > { %v324_v50 = vmul.f32 0.6931472, %v631_v49 }
 0x2d5   : > { %v326_v51 = vsel %vm325_vm1, %v324_v50, 0.0 }
 0x2d6   : > { %327 = vadd.xlane.f32.xlu1 %v326_v51 }
 0x35f   : > { %v328_v52 = vpop.xlane.xlu1 %327 }
 0x360   : > { %v329_v53 = vrot.slane %v328_v52, 4 }
 0x362   : > { %v330_v54 = vadd.f32 %v329_v53, %v328_v52 }
 0x364   : > { %v331_v55 = vrot.slane %v330_v54, 2 }
 0x366   : > { %v332_v56 = vadd.f32 %v331_v55, %v330_v54 }
 0x368   : > { %v333_v57 = vrot.slane %v332_v56, 1 }
 0x36a   : > { %v334_v58 = vadd.f32 %v333_v57, %v332_v56 }
 0x36c   : > { %535 = vpush %v334_v58 }
 0x39a   : > { %339 = sbr.rel (%p1024_p0) target bundleno = 1136 (0x470), region = 56 }
 0x39d   : > { %s536_s7 = spop %535 }
 0x39e   : > { %v336_v59 = vstv %s536_s7 }
 0x39f   : > { %v342_v60 = vld [vmem:[#allocation3] sm:$0xff]  ;;  %v343_v61 = vld [vmem:[#allocation4] sm:$0xff]  ;;  %v340_v7 = vld [vmem:[#allocation2] sm:$0x1]  ;;  %vm357_vm2 = vcmask 0  }
 0x3a0   : > { %v344_v62 = vsub.f32 %v342_v60, %v343_v61  ;;  %v341_v8 = vadd.f32 %v340_v7, %v336_v59 }
 0x3a2   : > { %v345_v63 = vmul.f32 %v344_v62, %v957_v45 }
 0x3a4   : > { %346 = vadd.xlane.f32.xlu0 %v345_v63 }
 0x42d   : > { %v347_v0 = vpop.xlane.xlu0 %346 }
 0x42e   : > { %v348_v1 = vrot.slane %v347_v0, 4 }
 0x430   : > { %v349_v2 = vadd.f32 %v348_v1, %v347_v0 }
 0x432   : > { %v350_v3 = vrot.slane %v349_v2, 2 }
 0x434   : > { %v351_v4 = vadd.f32 %v350_v3, %v349_v2 }
 0x436   : > { %v352_v5 = vrot.slane %v351_v4, 1 }
 0x438   : > { %v353_v6 = vadd.f32 %v352_v5, %v351_v4 }
 0x43a   : > { %537 = vpush %v353_v6 }
 0x46b   : > { %s538_s21 = spop %537 }
 0x46c   : > { %v355_v9 = vstv %s538_s21 }
 0x46d   : > { %v356_v10 = vsub.f32 %v341_v8, %v355_v9 }
 0x46f   : > { %358 = vst.msk [vmem:[#allocation2] sm:$0x1] %vm357_vm2, %v356_v10 }
 0x470 PF: > { %p526_p9 = scmp.ne.s32.totalorder %s854_s22, 1 }
 0x472   : > { %362 = sbr.rel (%p526_p9) target bundleno = 1350 (0x546), region = 60 }
 0x477   : > { %v365_v11 = vld [vmem:[#allocation4] sm:$0xff]  ;;  %v363_v20 = vld [vmem:[#allocation2] sm:$0x1]  ;;  %vm378_vm3 = vcmask 0  }
 0x478   : > { %v366_v12 = vmul.f32 %v365_v11, %v957_v45  ;;  %v364_v21 = vadd.f32 %v363_v20, %v336_v59 }
 0x47a   : > { %367 = vadd.xlane.f32.xlu0 %v366_v12 }
 0x503   : > { %v368_v13 = vpop.xlane.xlu0 %367 }
 0x504   : > { %v369_v14 = vrot.slane %v368_v13, 4 }
 0x506   : > { %v370_v15 = vadd.f32 %v369_v14, %v368_v13 }
 0x508   : > { %v371_v16 = vrot.slane %v370_v15, 2 }
 0x50a   : > { %v372_v17 = vadd.f32 %v371_v16, %v370_v15 }
 0x50c   : > { %v373_v18 = vrot.slane %v372_v17, 1 }
 0x50e   : > { %v374_v19 = vadd.f32 %v373_v18, %v372_v17 }
 0x510   : > { %539 = vpush %v374_v19 }
 0x541   : > { %s540_s8 = spop %539 }
 0x542   : > { %v376_v22 = vstv %s540_s8 }
 0x543   : > { %v377_v23 = vsub.f32 %v364_v21, %v376_v22 }
 0x545   : > { %379 = vst.msk [vmem:[#allocation2] sm:$0x1] %vm378_vm3, %v377_v23 }
 0x546 PF: > { %p527_p10 = scmp.lt.s32.totalorder %s854_s22, 2 }
 0x548   : > { %383 = sbr.rel (%p527_p10) target bundleno = 1564 (0x61c), region = 64 }
 0x54d   : > { %v387_v24 = vld [vmem:[#allocation3] sm:$0xff]  ;;  %v385_v33 = vmul.f32 2.0, %v336_v59  ;;  %v384_v34 = vld [vmem:[#allocation2] sm:$0x1]  ;;  %vm400_vm4 = vcmask 0  }
 0x54e   : > { %v388_v25 = vmul.f32 %v387_v24, %v957_v45 }
 0x54f   : > { %v386_v35 = vadd.f32 %v385_v33, %v384_v34 }
 0x550   : > { %389 = vadd.xlane.f32.xlu0 %v388_v25 }
 0x5d9   : > { %v390_v26 = vpop.xlane.xlu0 %389 }
 0x5da   : > { %v391_v27 = vrot.slane %v390_v26, 4 }
 0x5dc   : > { %v392_v28 = vadd.f32 %v391_v27, %v390_v26 }
 0x5de   : > { %v393_v29 = vrot.slane %v392_v28, 2 }
 0x5e0   : > { %v394_v30 = vadd.f32 %v393_v29, %v392_v28 }
 0x5e2   : > { %v395_v31 = vrot.slane %v394_v30, 1 }
 0x5e4   : > { %v396_v32 = vadd.f32 %v395_v31, %v394_v30 }
 0x5e6   : > { %541 = vpush %v396_v32 }
 0x617   : > { %s542_s9 = spop %541 }
 0x618   : > { %v398_v36 = vstv %s542_s9 }
 0x619   : > { %v399_v37 = vsub.f32 %v386_v35, %v398_v36 }
 0x61b   : > { %401 = vst.msk [vmem:[#allocation2] sm:$0x1] %vm400_vm4, %v399_v37 }
 0x61c PF: > { %p528_p11 = scmp.ne.s32.totalorder %s854_s22, 5 }
 0x61e   : > { %405 = sbr.rel (%p528_p11) target bundleno = 1575 (0x627), region = 68 }
 0x623   : > { %v406_v38 = vld [vmem:[#allocation2] sm:$0x1]  ;;  %vm408_vm5 = vcmask 0  }
 0x624   : > { %v407_v39 = vmul.f32 0.0125, %v406_v38 }
 0x626   : > { %409 = vst.msk [vmem:[#allocation12] sm:$0x1] %vm408_vm5, %v407_v39 }
 0x627 PF: > { %p577_p12 = scmp.eq.s32.totalorder %s854_s22, 5  ;;  %s803_s10 = smov [#allocation12]  }
 0x628   : > { %s417_s11 = sshll.u32 %s803_s10, 4  ;;  %s804_s12 = smov [#allocation13]   ;;  %s418_s11 = int_to_ptr.vmem [resolvable:$true] %s417_s11 }
 0x629   : > { %s428_s13 = sshll.u32 %s804_s12, 4  ;;  %s697_s15 = scalar_lea.vmem %s418_s11, 16  ;;  %s429_s13 = int_to_ptr.vmem [resolvable:$true] %s428_s13 }
 0x62a   : > { %p698_p13 = scmp.ne.s32.totalorder %s418_s11, %s697_s15  ;;  %s703_s16 = scalar_lea.vmem %s418_s11, 32 }
 0x62b   : > { %p704_p7 = scmp.lt.s32.totalorder %s418_s11, %s418_s11  ;;  %p705_p4 = scmp.lt.s32.totalorder %s703_s16, %s697_s15 }
 0x62c   : > { %p699_p2 = pnand %p698_p13, %p577_p12 }
 0x62d   : > { %p706_p1 = por %p705_p4, %p704_p7 }
 0x62e   : > { %p700_p3 = pneg %p699_p2 }
 0x630   : > { %p707_p5 = pnand %p706_p1, %p700_p3 }
 0x632   : > { %710 = shalt.err (!%p707_p5)
}
 0x633   : > { %554 = dma.vmem_to_hbm [thread:$0]  (%p577_p12), %s418_s11, 16, %s1008_s4, [#allocation7]  }
 0x634   : > { %s721_s25 = scalar_lea.vmem %s429_s13, 16  ;;  %s727_s26 = scalar_lea.vmem %s429_s13, 32 }
 0x635   : > { %p722_p6 = scmp.ne.s32.totalorder %s429_s13, %s721_s25  ;;  %p728_p9 = scmp.lt.s32.totalorder %s429_s13, %s429_s13 }
 0x636   : > { %p729_p10 = scmp.lt.s32.totalorder %s727_s26, %s721_s25 }
 0x637   : > { %p723_p8 = pnand %p722_p6, %p577_p12 }
 0x638   : > { %p730_p11 = por %p729_p10, %p728_p9 }
 0x639   : > { %p724_p0 = pneg %p723_p8 }
 0x63b   : > { %p731_p13 = pnand %p730_p11, %p724_p0 }
 0x63d   : > { %734 = shalt.err (!%p731_p13)
}
 0x63e   : > { %556 = dma.vmem_to_hbm [thread:$0]  (%p577_p12), %s429_s13, 16, %s1009_s5, [#allocation14]  }
 0x63f   : > { %774 = dma.done.wait (%p577_p12), [#allocation7], 16  }
 0x640   : > { %776 = vsyncadd (%p577_p12), [#allocation7], 4294967280 }
 0x641   : > { %778 = dma.done.wait (%p577_p12), [#allocation14], 16  }
 0x642   : > { %780 = vsyncadd (%p577_p12), [#allocation14], 4294967280 }
 0x643 PF: > { %p20_p2 = scmp.ge.s32.totalorder %s880_s28, 8   ;;  %s1025_s18 = smov %s787_s19 }
 0x644   : > { %s1026_s19 = smov %s791_s20  ;;  %s1027_s20 = smov %s901_s14 }
 0x645   : > { %s1028_s21 = smov %s880_s28  ;;  %22 = sbr.rel (!%p20_p2) target bundleno = 7 (0x7), region = 110 }
 0x64a   :  { %445 = vsyncpa [#allocation6], 1 }
 0x64b   :  { %447 = vsyncpa [#allocation6 + $0x1], 1 }
 0x64c   :  { %448 = vsyncpa [#allocation11], 1 }
 0x64d   :  { %449 = vsyncpa [#allocation7], 1 }
 0x64e   :  { %451 = vsyncpa [#allocation7 + $0x1], 1 }
 0x64f   :  { %452 = vsyncpa [#allocation14], 1 }
 0x650   :  { %453 = vsyncpa [#allocation8], 1 }
 0x651   :  { %455 = vsyncpa [#allocation8 + $0x1], 1 }

</bundles_post_ra>
